<compile_context>
chip_gen: v7x
topology: tpu7x:2x2x1
jax: 0.10.0
libtpu: 0.0.40
codegen_flags: <defaults>
</compile_context>

<pallas_src>
import jax
import jax.numpy as jnp
from jax.experimental import pallas as pl
from jax.experimental.pallas import tpu as pltpu

_LANES = 128
_TILE_ROWS_MAX = 2048   # 2048 x 128 f32 = 1 MiB per block per input
_NUM_SPLITS = 2         # leading "parallel" axis (both TCs on v7x; harmless elsewhere)
_ROW_GRAN = 32          # row granularity legal for f32 / bf16 / 8-bit blocks


def _round_up(x, m):
    return ((x + m - 1) // m) * m


def _make_sse_kernel(tile_rows, lanes, blocks_per_split, valid_rows, needs_mask):
    """Kernel accumulating sum((p - t)^2) per 'split' (outer grid axis)."""

    def kernel(p_ref, t_ref, o_ref, acc_ref):
        i = pl.program_id(1)

        @pl.when(i == 0)
        def _():
            acc_ref[...] = jnp.zeros_like(acc_ref)

        # upcast per tile (inputs travel through HBM in their native dtype)
        d = p_ref[...].astype(jnp.float32) - t_ref[...].astype(jnp.float32)
        sq = d * d

        if needs_mask:
            # zero out rows that lie past the real data (partial / OOB-clamped blocks)
            c = pl.program_id(0)
            base = (c * blocks_per_split + i) * tile_rows
            row_ids = base + jax.lax.broadcasted_iota(
                jnp.int32, (tile_rows, lanes), 0)
            sq = jnp.where(row_ids < valid_rows, sq, 0.0)

        # keep the cross-grid carry a cheap (1,128) vector add; no per-step
        # scalar SMEM read-modify-write.
        acc_ref[...] += jnp.sum(sq, axis=0, keepdims=True)

        @pl.when(i == pl.num_programs(1) - 1)
        def _():
            o_ref[0, 0] = jnp.sum(acc_ref[...])

    return kernel


def _mse_pallas(pred, targ, *, tile_rows_max=_TILE_ROWS_MAX, lanes=_LANES,
                num_splits=_NUM_SPLITS):
    """MSELoss (mean over all elements) via a single Pallas reduction kernel."""
    assert pred.shape == targ.shape, (pred.shape, targ.shape)
    n = int(pred.size)
    if n == 0:
        return jnp.float32(0.0)

    p = pred.reshape(-1)
    t = targ.reshape(-1)
    # keep native floating dtype (kernel upcasts per tile); only cast non-floats
    if not jnp.issubdtype(p.dtype, jnp.floating):
        p = p.astype(jnp.float32)
    if not jnp.issubdtype(t.dtype, jnp.floating):
        t = t.astype(jnp.float32)

    # Lane alignment: pad only when n is not already a multiple of 128.
    # (zero padding on both operands contributes 0 to the SSE; divisor stays n)
    npad = (-n) % lanes
    if npad:
        p = jnp.pad(p, (0, npad))
        t = jnp.pad(t, (0, npad))
    rows = (n + npad) // lanes
    p2 = p.reshape(rows, lanes)
    t2 = t.reshape(rows, lanes)

    # ---- tiling choice -------------------------------------------------
    if rows <= 2 * _ROW_GRAN:
        # tiny input: one block covering the whole array (always a legal block)
        num_splits_eff = 1
        tile_rows = rows
        blocks_per_split = 1
    else:
        num_splits_eff = num_splits
        rows_per_split = pl.cdiv(rows, num_splits_eff)
        tile_rows = max(_ROW_GRAN,
                        min(tile_rows_max, _round_up(rows_per_split, _ROW_GRAN)))
        tile_rows = min(tile_rows, (rows // _ROW_GRAN) * _ROW_GRAN)  # tile <= rows
        blocks_per_split = pl.cdiv(rows_per_split, tile_rows)

    last_block = pl.cdiv(rows, tile_rows) - 1
    covered_rows = num_splits_eff * blocks_per_split * tile_rows
    needs_mask = covered_rows != rows
    needs_clamp = (num_splits_eff * blocks_per_split - 1) > last_block

    def in_idx_map(c, i):
        gb = c * blocks_per_split + i
        if needs_clamp:
            # fully-OOB blocks re-read the last valid block; masked to 0 in-kernel
            gb = jnp.minimum(gb, last_block)
        return (gb, 0)

    kernel = _make_sse_kernel(tile_rows, lanes, blocks_per_split, rows, needs_mask)

    partials = pl.pallas_call(
        kernel,
        out_shape=jax.ShapeDtypeStruct((num_splits_eff, 1), jnp.float32),
        grid_spec=pltpu.PrefetchScalarGridSpec(
            num_scalar_prefetch=0,
            grid=(num_splits_eff, blocks_per_split),
            in_specs=[
                pl.BlockSpec((tile_rows, lanes), in_idx_map),
                pl.BlockSpec((tile_rows, lanes), in_idx_map),
            ],
            out_specs=pl.BlockSpec((1, 1), lambda c, i: (c, 0),
                                   memory_space=pltpu.SMEM),
            scratch_shapes=[pltpu.VMEM((1, lanes), jnp.float32)],
        ),
        compiler_params=pltpu.CompilerParams(
            dimension_semantics=("parallel", "arbitrary")),
    )(p2, t2)

    return jnp.sum(partials) / jnp.float32(n)


def train_loss(prediction, target):
    """Pallas equivalent of TrainLoss.forward."""
    prediction_keypoints, prediction_descriptors = prediction
    target_keypoints, target_descriptors = target, prediction_descriptors

    kp_loss = _mse_pallas(prediction_keypoints, target_keypoints)

    # DescriptorLoss term is MSE(x, x) == 0 exactly (the module compares the
    # descriptors with themselves) — add an exact zero instead of streaming
    # the descriptor tensor through HBM.
    desc_dtype = target_descriptors.dtype
    if not jnp.issubdtype(desc_dtype, jnp.floating):
        desc_dtype = jnp.float32
    desc_loss = jnp.zeros((), dtype=desc_dtype)

    return kp_loss + desc_loss


if __name__ == "__main__":
    key = jax.random.PRNGKey(0)
    k1, k2, k3 = jax.random.split(key, 3)

    # small shapes consistent with a keypoint/descriptor head (NCHW)
    pred_kp = jax.random.normal(k1, (2, 4, 16, 16), dtype=jnp.float32)
    targ_kp = jax.random.normal(k2, (2, 4, 16, 16), dtype=jnp.float32)
    pred_desc = jax.random.normal(k3, (2, 8, 16, 16), dtype=jnp.float32)

    loss = train_loss((pred_kp, pred_desc), targ_kp)
    loss = jax.block_until_ready(loss)

    ref = jnp.mean((pred_kp - targ_kp) ** 2) + jnp.mean((pred_desc - pred_desc) ** 2)
    assert jnp.allclose(loss, ref, rtol=1e-5, atol=1e-6), (loss, ref)

    # extra check: bf16 inputs, multi-block aligned path (no masking)
    k4, k5 = jax.random.split(k3)
    a = jax.random.normal(k4, (2, 16, 32, 32), dtype=jnp.bfloat16)
    b = jax.random.normal(k5, (2, 16, 32, 32), dtype=jnp.bfloat16)
    mse = jax.block_until_ready(_mse_pallas(a, b))
    ref2 = jnp.mean((a.astype(jnp.float32) - b.astype(jnp.float32)) ** 2)
    assert jnp.allclose(mse, ref2, rtol=1e-5, atol=1e-6), (mse, ref2)

    # extra check: ragged row count exercising the mask + clamped-OOB-block path
    k6, k7 = jax.random.split(k4)
    c = jax.random.normal(k6, (65, 128), dtype=jnp.float32)
    d = jax.random.normal(k7, (65, 128), dtype=jnp.float32)
    mse2 = jax.block_until_ready(_mse_pallas(c, d, tile_rows_max=32))
    ref3 = jnp.mean((c - d) ** 2)
    assert jnp.allclose(mse2, ref3, rtol=1e-5, atol=1e-6), (mse2, ref3)

    print("KERNEL_OK")
</pallas_src>

<mosaic_0001>
module attributes {stable_mosaic.version = 11 : i64} {
  func.func @kernel(%arg0: i32, %arg1: i32, %arg2: memref<16x128xf32, #tpu.memory_space<vmem>>, %arg3: memref<16x128xf32, #tpu.memory_space<vmem>>, %arg4: memref<1x1xf32, #tpu.memory_space<smem>>, %arg5: memref<1x128xf32, #tpu.memory_space<vmem>>) attributes {dimension_semantics = [#tpu.dimension_semantics<parallel>, #tpu.dimension_semantics<arbitrary>], iteration_bounds = array<i64: 1, 1>, scalar_prefetch = 0 : i64, scratch_operands = 1 : i64, tpu.core_type = #tpu.core_type<tc>, window_params = [{transform_indices = @transform_0, window_bounds = array<i64: 16, 128>}, {transform_indices = @transform_1, window_bounds = array<i64: 16, 128>}, {transform_indices = @transform_2, window_bounds = array<i64: 1, 1>}]} {
    %c0_i32 = arith.constant 0 : i32
    %0 = arith.cmpi eq, %arg1, %c0_i32 : i32
    %1 = arith.extui %0 : i1 to i32
    %c0_i32_0 = arith.constant 0 : i32
    %2 = arith.cmpi ne, %1, %c0_i32_0 : i32
    scf.if %2 {
      %cst_10 = arith.constant 0.000000e+00 : f32
      %15 = vector.broadcast %cst_10 : f32 to vector<1x128xf32>
      %c0_11 = arith.constant 0 : index
      %c0_12 = arith.constant 0 : index
      %16 = vector.load %arg5[%c0_11, %c0_12] : memref<1x128xf32, #tpu.memory_space<vmem>>, vector<1x128xf32>
      tpu.vector_store %arg5[%c0_11, %c0_12], %15 {strides = array<i32>} : memref<1x128xf32, #tpu.memory_space<vmem>>, vector<1x128xf32>,
    } else {
    }
    %c0 = arith.constant 0 : index
    %c0_1 = arith.constant 0 : index
    %3 = vector.load %arg2[%c0, %c0_1] : memref<16x128xf32, #tpu.memory_space<vmem>>, vector<16x128xf32>
    %c0_2 = arith.constant 0 : index
    %c0_3 = arith.constant 0 : index
    %4 = vector.load %arg3[%c0_2, %c0_3] : memref<16x128xf32, #tpu.memory_space<vmem>>, vector<16x128xf32>
    %5 = arith.subf %3, %4 : vector<16x128xf32>
    %6 = arith.mulf %5, %5 : vector<16x128xf32>
    %c0_4 = arith.constant 0 : index
    %c0_5 = arith.constant 0 : index
    %7 = vector.load %arg5[%c0_4, %c0_5] : memref<1x128xf32, #tpu.memory_space<vmem>>, vector<1x128xf32>
    %cst = arith.constant dense<0.000000e+00> : vector<128xf32>
    %8 = vector.multi_reduction <add>, %6, %cst [0] : vector<16x128xf32> to vector<128xf32>
    %9 = vector.shape_cast %8 : vector<128xf32> to vector<1x128xf32>
    %10 = arith.addf %7, %9 : vector<1x128xf32>
    %c0_6 = arith.constant 0 : index
    %c0_7 = arith.constant 0 : index
    %11 = vector.load %arg5[%c0_6, %c0_7] : memref<1x128xf32, #tpu.memory_space<vmem>>, vector<1x128xf32>
    tpu.vector_store %arg5[%c0_6, %c0_7], %10 {strides = array<i32>} : memref<1x128xf32, #tpu.memory_space<vmem>>, vector<1x128xf32>,
    %c0_i32_8 = arith.constant 0 : i32
    %12 = arith.cmpi eq, %arg1, %c0_i32_8 : i32
    %13 = arith.extui %12 : i1 to i32
    %c0_i32_9 = arith.constant 0 : i32
    %14 = arith.cmpi ne, %13, %c0_i32_9 : i32
    scf.if %14 {
      %c0_10 = arith.constant 0 : index
      %c0_11 = arith.constant 0 : index
      %15 = vector.load %arg5[%c0_10, %c0_11] : memref<1x128xf32, #tpu.memory_space<vmem>>, vector<1x128xf32>
      %16 = vector.shape_cast %15 : vector<1x128xf32> to vector<1x1x128xf32>
      %cst_12 = arith.constant dense<0.000000e+00> : vector<1xf32>
      %17 = vector.multi_reduction <add>, %16, %cst_12 [1, 2] : vector<1x1x128xf32> to vector<1xf32>
      %18 = vector.shape_cast %17 : vector<1xf32> to vector<1x1x1xf32>
      %19 = vector.extract %18[0, 0, 0] : f32 from vector<1x1x1xf32>
      %c0_13 = arith.constant 0 : index
      %c0_14 = arith.constant 0 : index
      %20 = memref.load %arg4[%c0_13, %c0_14] : memref<1x1xf32, #tpu.memory_space<smem>>
      memref.store %19, %arg4[%c0_13, %c0_14] : memref<1x1xf32, #tpu.memory_space<smem>>
    } else {
    }
    return
  }
  func.func @transform_0(%arg0: i32, %arg1: i32) -> (i32, i32) {
    %c1_i32 = arith.constant 1 : i32
    %0 = arith.muli %arg0, %c1_i32 : i32
    %1 = arith.addi %0, %arg1 : i32
    %c0_i32 = arith.constant 0 : i32
    %c0_i32_0 = arith.constant 0 : i32
    return %1, %c0_i32 : i32, i32
  }
  func.func @transform_1(%arg0: i32, %arg1: i32) -> (i32, i32) {
    %c1_i32 = arith.constant 1 : i32
    %0 = arith.muli %arg0, %c1_i32 : i32
    %1 = arith.addi %0, %arg1 : i32
    %c0_i32 = arith.constant 0 : i32
    %c0_i32_0 = arith.constant 0 : i32
    return %1, %c0_i32 : i32, i32
  }
  func.func @transform_2(%arg0: i32, %arg1: i32) -> (i32, i32) {
    %c0_i32 = arith.constant 0 : i32
    %c0_i32_0 = arith.constant 0 : i32
    return %arg0, %c0_i32 : i32, i32
  }
}

</mosaic_0001>

<bundles_post_ra>
// kernel: tpu_custom_call.1
= control target key start
LH: loop header
LB: loop body
LE: loop exit
PB: predicated region body
PF: predicated region fallthrough
CT: control target
= control target key end

     0   :  { %7 = vsyncpa [#allocation4], 0  ;;  %s232_s0 = inlined_call_operand.hbm [shape: f32[16,128], index: 0, kind: input, shape index: {}]   ;;  %s233_s1 = inlined_call_operand.hbm [shape: f32[16,128], index: 1, kind: input, shape index: {}]   ;;  %s234_s2 = inlined_call_operand.hbm [shape: f32[1,1], index: 2, kind: output, shape index: {}]  }
   0x1   :  { %8 = vsyncpa [#allocation7], 0 }
   0x2   :  { %9 = vsyncpa [#allocation5], 0  ;;  %s175_s9 = smov [#allocation3]   ;;  %s115_s13 = scalar_lea.hbm %s232_s0, 256 }
   0x3   :  { %s19_s10 = sshll.u32 %s175_s9, 4  ;;  %p116_p0 = scmp.ne.s32.totalorder %s232_s0, %s115_s13  ;;  %s20_s10 = int_to_ptr.vmem [resolvable:$true] %s19_s10 }
   0x4   :  { %p119_p1 = scmp.lt.u32.totalorder %s115_s13, %s232_s0 }
   0x6   :  { %p121_p2 = pnand %p119_p1, %p116_p0 }
   0x8   :  { %124 = shalt.err (!%p121_p2)
}
   0x9   :  { %s125_s18 = scalar_lea.vmem %s20_s10, 256  ;;  %p130_p4 = scmp.lt.s32.totalorder %s20_s10, %s20_s10 }
   0xa   :  { %p126_p3 = scmp.ne.s32.totalorder %s20_s10, %s125_s18  ;;  %p131_p5 = scmp.lt.s32.totalorder %s125_s18, %s125_s18 }
   0xc   :  { %p132_p6 = por %p131_p5, %p130_p4 }
   0xe   :  { %p133_p7 = pnand %p132_p6, %p126_p3 }
  0x10   :  { %136 = shalt.err (!%p133_p7)
}
  0x11   :  { %s176_s19 = smov 128   ;;  %s177_s20 = smov 8  }
  0x12   :  { %25 = dma.hbm_to_vmem [thread:$0]  %s232_s0, 256, %s20_s10, [#allocation4], %s176_s19, %s176_s19, %s177_s20  }
  0x13   :  { %s178_s23 = smov [#allocation6]   ;;  %s137_s27 = scalar_lea.hbm %s233_s1, 256 }
  0x14   :  { %s35_s24 = sshll.u32 %s178_s23, 4  ;;  %p138_p8 = scmp.ne.s32.totalorder %s233_s1, %s137_s27  ;;  %s36_s24 = int_to_ptr.vmem [resolvable:$true] %s35_s24 }
  0x15   :  { %p141_p9 = scmp.lt.u32.totalorder %s137_s27, %s233_s1 }
  0x17   :  { %p143_p10 = pnand %p141_p9, %p138_p8 }
  0x19   :  { %146 = shalt.err (!%p143_p10)
}
  0x1a   :  { %s147_s4 = scalar_lea.vmem %s36_s24, 256  ;;  %p152_p12 = scmp.lt.s32.totalorder %s36_s24, %s36_s24 }
  0x1b   :  { %p148_p11 = scmp.ne.s32.totalorder %s36_s24, %s147_s4  ;;  %p153_p13 = scmp.lt.s32.totalorder %s147_s4, %s147_s4 }
  0x1d   :  { %p154_p0 = por %p153_p13, %p152_p12 }
  0x1f   :  { %p155_p1 = pnand %p154_p0, %p148_p11 }
  0x21   :  { %158 = shalt.err (!%p155_p1)
}
  0x22   :  { %41 = dma.hbm_to_vmem [thread:$0]  %s233_s1, 256, %s36_s24, [#allocation7], %s176_s19, %s176_s19, %s177_s20  }
  0x23   :  { %169 = dma.done.wait [#allocation4], 256  }
  0x24   :  { %170 = vsyncadd [#allocation4], 4294967040 }
  0x25   :  { %171 = dma.done.wait [#allocation7], 256  }
  0x26   :  { %172 = vsyncadd [#allocation7], 4294967040  ;;  %v179_v0 = vmov 0.0   ;;  %v57_v1 = vld [vmem:[#allocation3] sm:$0xff]  ;;  %v58_v2 = vld [vmem:[#allocation3 + $0x8] sm:$0xff]  ;;  %vm79_vm0 = vcmask 1040384  }
  0x27   :  { %56 = vst [vmem:[#allocation2] sm:$0x1] %v179_v0  ;;  %v59_v3 = vld [vmem:[#allocation6] sm:$0xff]  ;;  %v60_v4 = vld [vmem:[#allocation6 + $0x8] sm:$0xff]  ;;  %s159_s8 = scalar_lea.hbm %s234_s2, 16 }
  0x28   :  { %v61_v5 = vsub.f32 %v57_v1, %v59_v3  ;;  %v62_v6 = vsub.f32 %v58_v2, %v60_v4  ;;  %p160_p2 = scmp.ne.s32.totalorder %s234_s2, %s159_s8  ;;  %p163_p3 = scmp.lt.u32.totalorder %s159_s8, %s234_s2 }
  0x2a   :  { %v63_v7 = vmul.f32 %v61_v5, %v61_v5  ;;  %v64_v8 = vmul.f32 %v62_v6, %v62_v6  ;;  %p165_p4 = pnand %p163_p3, %p160_p2 }
  0x2c   :  { %v66_v9 = vadd.f32 %v64_v8, %v63_v7 }
  0x2e   :  { %v67_v10 = vrot.slane %v66_v9, 4  ;;  %v65_v15 = vld [vmem:[#allocation2] sm:$0x1] }
  0x30   :  { %v68_v11 = vadd.f32 %v67_v10, %v66_v9 }
  0x32   :  { %v69_v12 = vrot.slane %v68_v11, 2 }
  0x34   :  { %v70_v13 = vadd.f32 %v69_v12, %v68_v11 }
  0x36   :  { %v71_v14 = vrot.slane %v70_v13, 1 }
  0x38   :  { %v72_v16 = vadd.f32 %v71_v14, %v70_v13 }
  0x3a   :  { %v73_v17 = vadd.f32 %v72_v16, %v65_v15 }
  0x3c   :  { %74 = vst [vmem:[#allocation2] sm:$0x1] %v73_v17 }
  0x43   :  { %v78_v18 = vld [vmem:[#allocation2] sm:$0x1] }
  0x44   :  { %v80_v19 = vsel %vm79_vm0, %v78_v18, 0.0 }
  0x45   :  { %81 = vadd.xlane.f32.xlu0 %v80_v19 }
  0xd2   :  { %v82_v20 = vpop.xlane.xlu0 %81 }
  0xd3   :  { %v83_v21 = vrot.slane %v82_v20, 4 }
  0xd5   :  { %v84_v22 = vadd.f32 %v83_v21, %v82_v20 }
  0xd7   :  { %v85_v23 = vrot.slane %v84_v22, 2 }
  0xd9   :  { %v86_v24 = vadd.f32 %v85_v23, %v84_v22 }
  0xdb   :  { %v87_v25 = vrot.slane %v86_v24, 1 }
  0xdd   :  { %v88_v26 = vadd.f32 %v87_v25, %v86_v24 }
  0xdf   :  { %107 = vpush %v88_v26 }
 0x110   :  { %s108_s1 = spop %107 }
 0x111   :  { %91 = sst [smem:[#allocation8]] %s108_s1 }
 0x112   :  { %168 = shalt.err (!%p165_p4)
}
 0x113   :  { %s180_s13 = smov [#allocation8]  }
 0x114   :  { %99 = dma.smem_to_hbm %s180_s13, 16, %s234_s2, [#allocation5]  }
 0x115   :  { %173 = dma.done.wait [#allocation5], 16  }
 0x116   :  { %174 = vsyncadd [#allocation5], 4294967280 }
 0x117   :  { %103 = sfence }
 0x118   :  { %104 = vsyncpa [#allocation4], 1 }
 0x119   :  { %105 = vsyncpa [#allocation7], 1 }
 0x11a   :  { %106 = vsyncpa [#allocation5], 1 }

</bundles_post_ra>
